<compile_context>
chip_gen: v7x
topology: tpu7x:2x2x1
jax: 0.10.0
libtpu: 0.0.40
codegen_flags: <defaults>
</compile_context>

<pallas_src>
import functools

import jax
import jax.numpy as jnp
from jax.experimental import pallas as pl
from jax.experimental.pallas import tpu as pltpu

_EPS = 1e-5


def _vmem_budget_bytes():
    """Per-generation scoped-VMEM budget (leave ~3/8 headroom for Mosaic scratch)."""
    try:
        cap = int(pltpu.get_tpu_info().vmem_capacity_bytes)
    except Exception:
        cap = None
    if not cap:
        cap = 64 * 1024 * 1024            # conservative default (v7x per-TensorCore VMEM)
    return int(min(cap * 5 // 8, 96 * 1024 * 1024))   # ~40 MiB on v7x, ~80 MiB on v5e/v6e


def _select_tiles(B, F, T, itemsize, budget_bytes):
    """Pick (tile_b, tile_f, tile_t) so the pipeline's big buffers fit the VMEM budget.

    Pass 2 keeps ~4 big buffers live (x-in + out, double-buffered), so target a block of
    ~budget/5 bytes.  Legality of the last two block dims: tile_t is a multiple of 128 or
    equals T; tile_f is a multiple of the sublane alignment or equals F.
    """
    sub_align = max(8, 32 // itemsize)                 # 8 for f32, 16 for bf16, 32 for i8
    elems = max(budget_bytes // 5 // itemsize, sub_align * 128)
    # Lane (T) tile.
    if T * sub_align <= elems:
        tile_t = T                                     # full extent is always legal
    else:
        tile_t = max(128, ((elems // sub_align) // 128) * 128)
    # Sublane (F) tile.
    rows = max(elems // tile_t, sub_align)
    tile_f = F if F <= rows else (rows // sub_align) * sub_align
    # Batch tile (keeps transfers large for short-T / large-B shapes).
    tile_b = int(min(B, max(1, elems // (tile_t * tile_f))))
    return tile_b, tile_f, tile_t


# ---------------------------------------------------------------------------
# Pass 1: per-channel sum / sum-of-squares over (B, T).  x block: (tile_b, tile_f, tile_t)
# ---------------------------------------------------------------------------
def _stats_kernel(x_ref, sum_ref, sq_ref, *, b_extent, t_extent, tile_b, tile_t,
                  mask_b, mask_t):
    b = pl.program_id(1)
    t = pl.program_id(2)

    @pl.when(jnp.logical_and(b == 0, t == 0))
    def _():
        sum_ref[...] = jnp.zeros_like(sum_ref)
        sq_ref[...] = jnp.zeros_like(sq_ref)

    x = x_ref[...].astype(jnp.float32)                 # (tile_b, tile_f, tile_t)
    if mask_t:                                         # lane tail: keep padding out of sums
        lane = jax.lax.broadcasted_iota(jnp.int32, x.shape, 2)
        x = jnp.where(t * tile_t + lane < t_extent, x, 0.0)
    if mask_b:                                         # batch tail
        row = jax.lax.broadcasted_iota(jnp.int32, x.shape, 0)
        x = jnp.where(b * tile_b + row < b_extent, x, 0.0)

    s = jnp.sum(jnp.sum(x, axis=2, keepdims=True), axis=0)        # (tile_f, 1)
    q = jnp.sum(jnp.sum(x * x, axis=2, keepdims=True), axis=0)    # (tile_f, 1)
    sum_ref[...] += s                                  # resident f32 accumulators
    sq_ref[...] += q
    # (Padded F rows of the accumulator hold garbage but are dropped at block writeback.)


# ---------------------------------------------------------------------------
# Pass 2: streaming normalize + conditional affine folded into one FMA.
# x block: (tile_b, tile_f, tile_t); scale/shift blocks: (tile_b, tile_f, 1)
# ---------------------------------------------------------------------------
def _norm_kernel(x_ref, scale_ref, shift_ref, o_ref):
    x = x_ref[...].astype(jnp.float32)
    o_ref[...] = (x * scale_ref[...] + shift_ref[...]).astype(o_ref.dtype)


def cbatchnorm1d(x, c, w_gamma, b_gamma, w_beta, b_beta, *, tiles=None):
    """x: (B, f_dim, T); c: (B, c_dim) or (B, c_dim, 1).  Returns (B, f_dim, T)."""
    B, F, T = x.shape
    if c.ndim == 3 and c.shape[-1] == 1:               # torch.squeeze(c) on trailing k=1
        c = c[..., 0]
    assert c.shape[0] == B
    assert c.shape[1] == w_gamma.shape[1]

    itemsize = jnp.dtype(x.dtype).itemsize
    budget = _vmem_budget_bytes()
    if tiles is None:
        tile_b, tile_f, tile_t = _select_tiles(B, F, T, itemsize, budget)
    else:
        tile_b, tile_f, tile_t = tiles

    nb = pl.cdiv(B, tile_b)
    nf = pl.cdiv(F, tile_f)
    nt = pl.cdiv(T, tile_t)

    # --- gamma/beta: tiny (B,C)@(C,F) GEMMs, hoisted out of the streaming kernels -----
    cf = c.astype(jnp.float32)
    gamma = cf @ w_gamma.astype(jnp.float32).T + b_gamma.astype(jnp.float32)[None, :]
    beta = cf @ w_beta.astype(jnp.float32).T + b_beta.astype(jnp.float32)[None, :]

    x_bytes = int(x.size) * itemsize

    # --- pass 1: per-channel batch statistics (single pass over x) --------------------
    stats = functools.partial(
        _stats_kernel, b_extent=B, t_extent=T, tile_b=tile_b, tile_t=tile_t,
        mask_b=(B % tile_b) != 0, mask_t=(T % tile_t) != 0)
    xsum, xsq = pl.pallas_call(
        stats,
        out_shape=(jax.ShapeDtypeStruct((F, 1), jnp.float32),
                   jax.ShapeDtypeStruct((F, 1), jnp.float32)),
        grid=(nf, nb, nt),                              # reduction axes (b, t) last
        in_specs=[pl.BlockSpec((tile_b, tile_f, tile_t), lambda f, b, t: (b, f, t))],
        out_specs=(pl.BlockSpec((tile_f, 1), lambda f, b, t: (f, 0)),
                   pl.BlockSpec((tile_f, 1), lambda f, b, t: (f, 0))),
        compiler_params=pltpu.CompilerParams(
            dimension_semantics=("parallel", "arbitrary", "arbitrary"),
            vmem_limit_bytes=budget),
        cost_estimate=pl.CostEstimate(flops=3 * int(x.size), transcendentals=0,
                                      bytes_accessed=x_bytes + 8 * F),
    )(x)

    # --- BN fold: scale = gamma*rsqrt(var+eps), shift = beta - mean*scale (tiny) ------
    inv_n = jnp.float32(1.0 / (B * T))
    mean = xsum[:, 0] * inv_n                                       # (F,)
    # TODO(synk): one-pass E[x^2]-E[x]^2 variance in f32; use a shifted/two-pass form if
    # |mean| >> std regimes ever need tighter agreement with jnp.var.
    var = jnp.maximum(xsq[:, 0] * inv_n - mean * mean, 0.0)         # biased variance
    inv_std = jax.lax.rsqrt(var + jnp.float32(_EPS))
    scale = gamma * inv_std[None, :]                                # (B, F)
    shift = beta - mean[None, :] * scale
    scale3 = scale[:, :, None]                                      # (B, F, 1)
    shift3 = shift[:, :, None]

    # --- pass 2: streaming out = x*scale + shift, native (B, F, T) layout -------------
    out = pl.pallas_call(
        _norm_kernel,
        out_shape=jax.ShapeDtypeStruct((B, F, T), x.dtype),
        grid=(nb, nf, nt),
        in_specs=[pl.BlockSpec((tile_b, tile_f, tile_t), lambda b, f, t: (b, f, t)),
                  pl.BlockSpec((tile_b, tile_f, 1), lambda b, f, t: (b, f, 0)),
                  pl.BlockSpec((tile_b, tile_f, 1), lambda b, f, t: (b, f, 0))],
        out_specs=pl.BlockSpec((tile_b, tile_f, tile_t), lambda b, f, t: (b, f, t)),
        compiler_params=pltpu.CompilerParams(
            dimension_semantics=("parallel", "parallel", "parallel"),
            vmem_limit_bytes=budget),
        cost_estimate=pl.CostEstimate(flops=2 * int(x.size), transcendentals=0,
                                      bytes_accessed=2 * x_bytes + 8 * B * F),
    )(x, scale3, shift3)
    return out


def _reference(x, c, w_gamma, b_gamma, w_beta, b_beta):
    if c.ndim == 3 and c.shape[-1] == 1:
        c = c[..., 0]
    gamma = c @ w_gamma.T + b_gamma[None, :]
    beta = c @ w_beta.T + b_beta[None, :]
    mean = jnp.mean(x, axis=(0, 2), keepdims=True)
    var = jnp.var(x, axis=(0, 2), keepdims=True)
    net = (x - mean) / jnp.sqrt(var + _EPS)
    return gamma[:, :, None] * net + beta[:, :, None]


if __name__ == "__main__":
    key = jax.random.PRNGKey(0)
    kx, kc, kwg, kwb = jax.random.split(key, 4)

    # --- main test: module-consistent small shapes, auto (budget-derived) tiles -------
    B, c_dim, f_dim, T = 2, 8, 32, 16
    x = jax.random.normal(kx, (B, f_dim, T), dtype=jnp.float32)
    c = jax.random.normal(kc, (B, c_dim, 1), dtype=jnp.float32)     # latent code (B, c_dim, 1)
    # Conv1d(c_dim, f_dim, 1).weight -> (f_dim, c_dim, 1); trailing k=1 dim dropped.
    # (The module's reset_parameters zeros the weights; use small random weights so the
    #  gamma/beta path is actually exercised.  Bias init matches the module.)
    w_gamma = 0.1 * jax.random.normal(kwg, (f_dim, c_dim), dtype=jnp.float32)
    w_beta = 0.1 * jax.random.normal(kwb, (f_dim, c_dim), dtype=jnp.float32)
    b_gamma = jnp.ones((f_dim,), dtype=jnp.float32)
    b_beta = jnp.zeros((f_dim,), dtype=jnp.float32)

    ref = _reference(x, c, w_gamma, b_gamma, w_beta, b_beta)
    out = jax.block_until_ready(cbatchnorm1d(x, c, w_gamma, b_gamma, w_beta, b_beta))
    assert out.shape == (B, f_dim, T)
    assert jnp.allclose(out, ref, atol=1e-4, rtol=1e-4), "mismatch (auto tiles)"

    # --- tail coverage: non-dividing F and B tiles, multi-step (b) reduction ----------
    B2, F2, T2 = 3, 40, 48
    x2 = jax.random.normal(kx, (B2, F2, T2), dtype=jnp.float32)
    c2 = jax.random.normal(kc, (B2, c_dim), dtype=jnp.float32)
    wg2 = 0.1 * jax.random.normal(kwg, (F2, c_dim), dtype=jnp.float32)
    wb2 = 0.1 * jax.random.normal(kwb, (F2, c_dim), dtype=jnp.float32)
    bg2 = jnp.ones((F2,), dtype=jnp.float32)
    bb2 = jnp.zeros((F2,), dtype=jnp.float32)
    ref2 = _reference(x2, c2, wg2, bg2, wb2, bb2)
    out2 = jax.block_until_ready(
        cbatchnorm1d(x2, c2, wg2, bg2, wb2, bb2, tiles=(2, 16, T2)))
    assert jnp.allclose(out2, ref2, atol=1e-4, rtol=1e-4), "mismatch (F/B tail tiles)"

    # --- lane-tail coverage: tile_t=128 with T=160 (masked T tail in the stats pass) --
    B3, F3, T3 = 2, 16, 160
    x3 = jax.random.normal(kc, (B3, F3, T3), dtype=jnp.float32)
    c3 = jax.random.normal(kx, (B3, c_dim), dtype=jnp.float32)
    wg3 = 0.1 * jax.random.normal(kwg, (F3, c_dim), dtype=jnp.float32)
    wb3 = 0.1 * jax.random.normal(kwb, (F3, c_dim), dtype=jnp.float32)
    bg3 = jnp.ones((F3,), dtype=jnp.float32)
    bb3 = jnp.zeros((F3,), dtype=jnp.float32)
    ref3 = _reference(x3, c3, wg3, bg3, wb3, bb3)
    out3 = jax.block_until_ready(
        cbatchnorm1d(x3, c3, wg3, bg3, wb3, bb3, tiles=(1, 8, 128)))
    assert jnp.allclose(out3, ref3, atol=1e-4, rtol=1e-4), "mismatch (T tail tiles)"

    print("KERNEL_OK")
</pallas_src>

<mosaic_0001>
module attributes {stable_mosaic.version = 11 : i64} {
  func.func @_stats_kernel(%arg0: i32, %arg1: i32, %arg2: i32, %arg3: memref<2x32x16xf32, #tpu.memory_space<vmem>>, %arg4: memref<32x1xf32, #tpu.memory_space<vmem>>, %arg5: memref<32x1xf32, #tpu.memory_space<vmem>>) attributes {dimension_semantics = [#tpu.dimension_semantics<parallel>, #tpu.dimension_semantics<arbitrary>, #tpu.dimension_semantics<arbitrary>], iteration_bounds = array<i64: 1, 1, 1>, scalar_prefetch = 0 : i64, scratch_operands = 0 : i64, tpu.core_type = #tpu.core_type<tc>, window_params = [{transform_indices = @transform_0, window_bounds = array<i64: 2, 32, 16>}, {transform_indices = @transform_1, window_bounds = array<i64: 32, 1>}, {transform_indices = @transform_2, window_bounds = array<i64: 32, 1>}]} {
    %c0_i32 = arith.constant 0 : i32
    %0 = arith.cmpi eq, %arg1, %c0_i32 : i32
    %c0_i32_0 = arith.constant 0 : i32
    %1 = arith.cmpi eq, %arg2, %c0_i32_0 : i32
    %2 = arith.andi %0, %1 : i1
    %3 = arith.extui %2 : i1 to i32
    %c0_i32_1 = arith.constant 0 : i32
    %4 = arith.cmpi ne, %3, %c0_i32_1 : i32
    scf.if %4 {
      %cst_15 = arith.constant 0.000000e+00 : f32
      %19 = vector.broadcast %cst_15 : f32 to vector<32x1xf32>
      %c0_16 = arith.constant 0 : index
      %c0_17 = arith.constant 0 : index
      %20 = vector.load %arg4[%c0_16, %c0_17] : memref<32x1xf32, #tpu.memory_space<vmem>>, vector<32x1xf32>
      tpu.vector_store %arg4[%c0_16, %c0_17], %19 {strides = array<i32>} : memref<32x1xf32, #tpu.memory_space<vmem>>, vector<32x1xf32>,
      %cst_18 = arith.constant 0.000000e+00 : f32
      %21 = vector.broadcast %cst_18 : f32 to vector<32x1xf32>
      %c0_19 = arith.constant 0 : index
      %c0_20 = arith.constant 0 : index
      %22 = vector.load %arg5[%c0_19, %c0_20] : memref<32x1xf32, #tpu.memory_space<vmem>>, vector<32x1xf32>
      tpu.vector_store %arg5[%c0_19, %c0_20], %21 {strides = array<i32>} : memref<32x1xf32, #tpu.memory_space<vmem>>, vector<32x1xf32>,
    } else {
    }
    %c0 = arith.constant 0 : index
    %c0_2 = arith.constant 0 : index
    %c0_3 = arith.constant 0 : index
    %5 = vector.load %arg3[%c0, %c0_2, %c0_3] : memref<2x32x16xf32, #tpu.memory_space<vmem>>, vector<2x32x16xf32>
    %cst = arith.constant dense<0.000000e+00> : vector<2x32xf32>
    %6 = vector.multi_reduction <add>, %5, %cst [2] : vector<2x32x16xf32> to vector<2x32xf32>
    %7 = vector.shape_cast %6 : vector<2x32xf32> to vector<2x32x1xf32>
    %cst_4 = arith.constant dense<0.000000e+00> : vector<32x1xf32>
    %8 = vector.multi_reduction <add>, %7, %cst_4 [0] : vector<2x32x1xf32> to vector<32x1xf32>
    %9 = arith.mulf %5, %5 : vector<2x32x16xf32>
    %cst_5 = arith.constant dense<0.000000e+00> : vector<2x32xf32>
    %10 = vector.multi_reduction <add>, %9, %cst_5 [2] : vector<2x32x16xf32> to vector<2x32xf32>
    %11 = vector.shape_cast %10 : vector<2x32xf32> to vector<2x32x1xf32>
    %cst_6 = arith.constant dense<0.000000e+00> : vector<32x1xf32>
    %12 = vector.multi_reduction <add>, %11, %cst_6 [0] : vector<2x32x1xf32> to vector<32x1xf32>
    %c0_7 = arith.constant 0 : index
    %c0_8 = arith.constant 0 : index
    %13 = vector.load %arg4[%c0_7, %c0_8] : memref<32x1xf32, #tpu.memory_space<vmem>>, vector<32x1xf32>
    %14 = arith.addf %13, %8 : vector<32x1xf32>
    %c0_9 = arith.constant 0 : index
    %c0_10 = arith.constant 0 : index
    %15 = vector.load %arg4[%c0_9, %c0_10] : memref<32x1xf32, #tpu.memory_space<vmem>>, vector<32x1xf32>
    tpu.vector_store %arg4[%c0_9, %c0_10], %14 {strides = array<i32>} : memref<32x1xf32, #tpu.memory_space<vmem>>, vector<32x1xf32>,
    %c0_11 = arith.constant 0 : index
    %c0_12 = arith.constant 0 : index
    %16 = vector.load %arg5[%c0_11, %c0_12] : memref<32x1xf32, #tpu.memory_space<vmem>>, vector<32x1xf32>
    %17 = arith.addf %16, %12 : vector<32x1xf32>
    %c0_13 = arith.constant 0 : index
    %c0_14 = arith.constant 0 : index
    %18 = vector.load %arg5[%c0_13, %c0_14] : memref<32x1xf32, #tpu.memory_space<vmem>>, vector<32x1xf32>
    tpu.vector_store %arg5[%c0_13, %c0_14], %17 {strides = array<i32>} : memref<32x1xf32, #tpu.memory_space<vmem>>, vector<32x1xf32>,
    return
  }
  func.func @transform_0(%arg0: i32, %arg1: i32, %arg2: i32) -> (i32, i32, i32) {
    %c0_i32 = arith.constant 0 : i32
    return %arg1, %arg0, %arg2 : i32, i32, i32
  }
  func.func @transform_1(%arg0: i32, %arg1: i32, %arg2: i32) -> (i32, i32) {
    %c0_i32 = arith.constant 0 : i32
    %c0_i32_0 = arith.constant 0 : i32
    return %arg0, %c0_i32 : i32, i32
  }
  func.func @transform_2(%arg0: i32, %arg1: i32, %arg2: i32) -> (i32, i32) {
    %c0_i32 = arith.constant 0 : i32
    %c0_i32_0 = arith.constant 0 : i32
    return %arg0, %c0_i32 : i32, i32
  }
}

</mosaic_0001>

<bundles_post_ra>
// kernel: tpu_custom_call.1
= control target key start
LH: loop header
LB: loop body
LE: loop exit
PB: predicated region body
PF: predicated region fallthrough
CT: control target
= control target key end

     0   :  { %vm33_vm0 = vcmask 130048   ;;  %vm16_vm1 = vcmask 7168   ;;  %v132_v22 = vmov 0.0   ;;  %s276_s0 = inlined_call_operand.vmem [shape: f32[2,32,16], index: 0, kind: input, shape index: {}]   ;;  %s277_s1 = inlined_call_operand.vmem [shape: f32[32,1], index: 1, kind: output, shape index: {0}]   ;;  %s278_s2 = inlined_call_operand.vmem [shape: f32[32,1], index: 2, kind: output, shape index: {1}]  }
   0x1   :  { %v27_v0 = vld [vmem:[%s276_s0 + $0x10] sm:$0xff]  ;;  %v25_v1 = vld [vmem:[%s276_s0] sm:$0xff]  ;;  %v28_v2 = vld [vmem:[%s276_s0 + $0x18] sm:$0xff]  ;;  %18 = vst.msk [vmem:[%s277_s1 + $0x8] sm:$0xff] %vm16_vm1, %v132_v22 }
   0x2   :  { %v40_v3 = vsel %vm33_vm0, %v27_v0, 0.0  ;;  %v34_v4 = vsel %vm33_vm0, %v25_v1, 0.0  ;;  %v26_v5 = vld [vmem:[%s276_s0 + $0x8] sm:$0xff]  ;;  %v43_v6 = vsel %vm33_vm0, %v28_v2, 0.0  ;;  %v29_v9 = vld [vmem:[%s276_s0 + $0x20] sm:$0xff]  ;;  %v32_v12 = vld [vmem:[%s276_s0 + $0x38] sm:$0xff]  ;;  %v62_v14 = vmul.f32 %v25_v1, %v25_v1 }
   0x3   :  { %41 = vadd.xlane.f32.xlu1 %v40_v3  ;;  %35 = vadd.xlane.f32.xlu0 %v34_v4  ;;  %v37_v7 = vsel %vm33_vm0, %v26_v5, 0.0  ;;  %v30_v8 = vld [vmem:[%s276_s0 + $0x28] sm:$0xff]  ;;  %v46_v11 = vsel %vm33_vm0, %v29_v9, 0.0  ;;  %v31_v13 = vld [vmem:[%s276_s0 + $0x30] sm:$0xff]  ;;  %v55_v15 = vsel %vm33_vm0, %v32_v12, 0.0  ;;  %v63_v17 = vmul.f32 %v26_v5, %v26_v5  ;;  %17 = vst.msk [vmem:[%s277_s1] sm:$0xff] %vm16_vm1, %v132_v22 }
   0x4   :  { %v49_v10 = vsel %vm33_vm0, %v30_v8, 0.0  ;;  %v52_v16 = vsel %vm33_vm0, %v31_v13, 0.0  ;;  %v64_v18 = vmul.f32 %v27_v0, %v27_v0  ;;  %v70_v20 = vsel %vm33_vm0, %v62_v14, 0.0  ;;  %19 = vst.msk [vmem:[%s277_s1 + $0x10] sm:$0xff] %vm16_vm1, %v132_v22  ;;  %20 = vst.msk [vmem:[%s277_s1 + $0x18] sm:$0xff] %vm16_vm1, %v132_v22 }
   0x5   :  { %v73_v19 = vsel %vm33_vm0, %v63_v17, 0.0  ;;  %v65_v21 = vmul.f32 %v28_v2, %v28_v2  ;;  %v67_v25 = vmul.f32 %v30_v8, %v30_v8  ;;  %v66_v26 = vmul.f32 %v29_v9, %v29_v9  ;;  %22 = vst.msk [vmem:[%s278_s2 + $0x8] sm:$0xff] %vm16_vm1, %v132_v22  ;;  %21 = vst.msk [vmem:[%s278_s2] sm:$0xff] %vm16_vm1, %v132_v22 }
   0x6   :  { %v76_v24 = vsel %vm33_vm0, %v64_v18, 0.0  ;;  %v69_v29 = vmul.f32 %v32_v12, %v32_v12  ;;  %v68_v30 = vmul.f32 %v31_v13, %v31_v13  ;;  %23 = vst.msk [vmem:[%s278_s2 + $0x10] sm:$0xff] %vm16_vm1, %v132_v22  ;;  %24 = vst.msk [vmem:[%s278_s2 + $0x18] sm:$0xff] %vm16_vm1, %v132_v22 }
   0x7   :  { %44 = vadd.xlane.f32.xlu1 %v43_v6  ;;  %38 = vadd.xlane.f32.xlu0 %v37_v7  ;;  %v79_v23 = vsel %vm33_vm0, %v65_v21, 0.0  ;;  %v85_v27 = vsel %vm33_vm0, %v67_v25, 0.0  ;;  %v82_v28 = vsel %vm33_vm0, %v66_v26, 0.0 }
   0x8   :  { %v91_v31 = vsel %vm33_vm0, %v69_v29, 0.0  ;;  %v88_v32 = vsel %vm33_vm0, %v68_v30, 0.0  ;;  %v99_v37 = vld [vmem:[%s277_s1 + $0x8] sm:$0xff] }
   0xa   :  { %v98_v39 = vld [vmem:[%s277_s1] sm:$0xff] }
   0xb   :  { %50 = vadd.xlane.f32.xlu1 %v49_v10  ;;  %47 = vadd.xlane.f32.xlu0 %v46_v11  ;;  %v101_v45 = vld [vmem:[%s277_s1 + $0x18] sm:$0xff]  ;;  %v100_v47 = vld [vmem:[%s277_s1 + $0x10] sm:$0xff] }
   0xc   :  { %v112_v57 = vld [vmem:[%s278_s2 + $0x8] sm:$0xff]  ;;  %v111_v59 = vld [vmem:[%s278_s2] sm:$0xff] }
   0xd   :  { %v114_v1 = vld [vmem:[%s278_s2 + $0x18] sm:$0xff]  ;;  %v113_v3 = vld [vmem:[%s278_s2 + $0x10] sm:$0xff] }
   0xf   :  { %56 = vadd.xlane.f32.xlu1 %v55_v15  ;;  %53 = vadd.xlane.f32.xlu0 %v52_v16 }
  0x13   :  { %74 = vadd.xlane.f32.xlu1 %v73_v19  ;;  %71 = vadd.xlane.f32.xlu0 %v70_v20 }
  0x17   :  { %80 = vadd.xlane.f32.xlu1 %v79_v23  ;;  %77 = vadd.xlane.f32.xlu0 %v76_v24 }
  0x1b   :  { %86 = vadd.xlane.f32.xlu1 %v85_v27  ;;  %83 = vadd.xlane.f32.xlu0 %v82_v28 }
  0x1f   :  { %92 = vadd.xlane.f32.xlu1 %v91_v31  ;;  %89 = vadd.xlane.f32.xlu0 %v88_v32 }
  0x90   :  { %v42_v33 = vpop.xlane.xlu1 %41  ;;  %v36_v34 = vpop.xlane.xlu0 %35 }
  0x94   :  { %v45_v35 = vpop.xlane.xlu1 %44  ;;  %v39_v36 = vpop.xlane.xlu0 %38 }
  0x98   :  { %v51_v38 = vpop.xlane.xlu1 %50  ;;  %v48_v40 = vpop.xlane.xlu0 %47 }
  0x99   :  { %v59_v41 = vadd.f32 %v51_v38, %v39_v36  ;;  %v58_v42 = vadd.f32 %v48_v40, %v36_v34 }
  0x9b   :  { %v103_v43 = vadd.f32 %v99_v37, %v59_v41  ;;  %v102_v44 = vadd.f32 %v98_v39, %v58_v42 }
  0x9c   :  { %v57_v46 = vpop.xlane.xlu1 %56  ;;  %v54_v48 = vpop.xlane.xlu0 %53 }
  0x9d   :  { %108 = vst.msk [vmem:[%s277_s1 + $0x8] sm:$0xff] %vm16_vm1, %v103_v43  ;;  %107 = vst.msk [vmem:[%s277_s1] sm:$0xff] %vm16_vm1, %v102_v44  ;;  %v61_v49 = vadd.f32 %v57_v46, %v45_v35  ;;  %v60_v50 = vadd.f32 %v54_v48, %v42_v33 }
  0x9f   :  { %v105_v51 = vadd.f32 %v101_v45, %v61_v49  ;;  %v104_v52 = vadd.f32 %v100_v47, %v60_v50 }
  0xa0   :  { %v75_v53 = vpop.xlane.xlu1 %74  ;;  %v72_v54 = vpop.xlane.xlu0 %71 }
  0xa1   :  { %110 = vst.msk [vmem:[%s277_s1 + $0x18] sm:$0xff] %vm16_vm1, %v105_v51  ;;  %109 = vst.msk [vmem:[%s277_s1 + $0x10] sm:$0xff] %vm16_vm1, %v104_v52 }
  0xa4   :  { %v81_v55 = vpop.xlane.xlu1 %80  ;;  %v78_v56 = vpop.xlane.xlu0 %77 }
  0xa8   :  { %v87_v58 = vpop.xlane.xlu1 %86  ;;  %v84_v60 = vpop.xlane.xlu0 %83 }
  0xa9   :  { %v95_v61 = vadd.f32 %v87_v58, %v75_v53  ;;  %v94_v62 = vadd.f32 %v84_v60, %v72_v54 }
  0xab   :  { %v116_v63 = vadd.f32 %v112_v57, %v95_v61  ;;  %v115_v0 = vadd.f32 %v111_v59, %v94_v62 }
  0xac   :  { %v93_v2 = vpop.xlane.xlu1 %92  ;;  %v90_v4 = vpop.xlane.xlu0 %89 }
  0xad   :  { %120 = vst.msk [vmem:[%s278_s2 + $0x8] sm:$0xff] %vm16_vm1, %v116_v63  ;;  %119 = vst.msk [vmem:[%s278_s2] sm:$0xff] %vm16_vm1, %v115_v0  ;;  %v97_v5 = vadd.f32 %v93_v2, %v81_v55  ;;  %v96_v6 = vadd.f32 %v90_v4, %v78_v56 }
  0xaf   :  { %v118_v7 = vadd.f32 %v114_v1, %v97_v5  ;;  %v117_v8 = vadd.f32 %v113_v3, %v96_v6 }
  0xb1   :  { %122 = vst.msk [vmem:[%s278_s2 + $0x18] sm:$0xff] %vm16_vm1, %v118_v7  ;;  %121 = vst.msk [vmem:[%s278_s2 + $0x10] sm:$0xff] %vm16_vm1, %v117_v8 }

</bundles_post_ra>
